<compile_context>
chip_gen: v5e
topology: v5e:2x2
jax: 0.10.0
libtpu: 0.0.40
codegen_flags: <defaults>
</compile_context>

<pallas_src>
import jax
import jax.numpy as jnp
from jax.experimental import pallas as pl
from jax.experimental.pallas import tpu as pltpu


def _round_up(v, m):
    return ((v + m - 1) // m) * m


def _normal_dist_decoder_kernel(x_ref, wmu_ref, bmu_ref, wlv_ref, blv_ref,
                                mu_ref, scale_ref):
    # x_ref: (TB, F)   w*_ref: (F, D)   b*_ref: (1, D)   mu/scale_ref: (TB, D)
    x = x_ref[...]
    mu = jnp.dot(x, wmu_ref[...], preferred_element_type=jnp.float32)
    mu = mu + bmu_ref[...]
    lv = jnp.dot(x, wlv_ref[...], preferred_element_type=jnp.float32)
    lv = lv + blv_ref[...]
    # Numerically-stable softplus on the logvar head only:
    #   softplus(z) = max(z, 0) + log1p(exp(-|z|))
    # (can underflow to exactly 0 for z < ~-87 in f32, matching PyTorch).
    scale = jnp.maximum(lv, 0.0) + jnp.log1p(jnp.exp(-jnp.abs(lv)))
    mu_ref[...] = mu.astype(mu_ref.dtype)
    scale_ref[...] = scale.astype(scale_ref.dtype)


def prepare_params(w_mu, b_mu, w_lv, b_lv, *, matmul_dtype=jnp.float32):
    """One-time parameter prep (hoisted out of the per-call path).

    Converts PyTorch nn.Linear layout ([D, F] weight, [D] bias) into the
    kernel layout ([F, D] weight, [1, D] f32 bias).  matmul_dtype=bf16 halves
    weight/x HBM traffic on v5e/v6e/v7x; MXU accumulation stays f32.
    """
    w_mu_t = jnp.asarray(w_mu).astype(matmul_dtype).T
    w_lv_t = jnp.asarray(w_lv).astype(matmul_dtype).T
    b_mu2 = jnp.asarray(b_mu, jnp.float32).reshape(1, -1)
    b_lv2 = jnp.asarray(b_lv, jnp.float32).reshape(1, -1)
    return w_mu_t, b_mu2, w_lv_t, b_lv2


def normal_dist_decoder(x, params, *, block_b=None, out_dtype=jnp.float32):
    """Pallas forward of NormalDistDecoder.

    Args:
      x:        [B, F] input features.
      params:   output of prepare_params().
      block_b:  batch-tile rows (default sized per VMEM budget / core count).
      out_dtype: dtype of mu / scale outputs (bf16 halves write-back traffic).
    Returns:
      (mu, scale): each [B, D] — parameters of the Normal distribution.
    """
    w_mu_t, b_mu2, w_lv_t, b_lv2 = params
    B, F = x.shape
    Fw, D = w_mu_t.shape
    assert Fw == F, "weight / input feature mismatch"
    matmul_dtype = w_mu_t.dtype

    # Cast x only if it does not already match the prepared weight dtype
    # (no f32 -> f32 bounce, no double cast).
    x_mm = x if x.dtype == matmul_dtype else x.astype(matmul_dtype)

    x_bytes = jnp.dtype(matmul_dtype).itemsize
    out_bytes = jnp.dtype(out_dtype).itemsize
    # Packed-sublane row alignment: 8 rows f32, 16 bf16, 32 int8/fp8.
    row_align = max(8, 32 // x_bytes)

    if block_b is None:
        # Large tiles (per-grid-step overhead ~0.35 us), but:
        #  * >= 2 parallel blocks once B exceeds one tile -> both v7x
        #    TensorCores get work,
        #  * <= 1024 rows (v5e/v6e single-core roofline sweet spot),
        #  * sized against a ~12 MiB VMEM budget (under v5e's 16 MiB scoped
        #    default and v7x's 32 MiB) counting double-buffered x / outputs
        #    plus the resident weights.
        weight_vmem = 2 * (2 * F * D * x_bytes + 2 * D * 4)
        per_row_vmem = 2 * F * x_bytes + 2 * 2 * D * out_bytes
        budget = 12 * 1024 * 1024
        cap = (budget - weight_vmem) // max(per_row_vmem, 1)
        cap = max(row_align, (cap // row_align) * row_align)
        cap = min(cap, 1024)
        if B > row_align:
            block_b = min(cap, _round_up(pl.cdiv(B, 2), row_align))
        else:
            block_b = row_align
    block_b = max(row_align, _round_up(block_b, row_align))

    grid = (pl.cdiv(B, block_b),)   # partial last block masked by Pallas

    cost = pl.CostEstimate(
        flops=2 * B * F * 2 * D,
        transcendentals=2 * B * D,                       # exp + log1p (lv head)
        bytes_accessed=(B * F * x_bytes + 2 * F * D * x_bytes + 2 * D * 4
                        + 2 * B * D * out_bytes),
    )

    # TODO(synk): for very large num_feat_in, add a K-reduction grid axis with
    # a VMEM accumulator instead of keeping both [F, D] weights resident, and
    # single-buffer them (pipeline_mode=pl.Buffered(1)) on v7x's smaller VMEM.
    mu, scale = pl.pallas_call(
        _normal_dist_decoder_kernel,
        out_shape=(jax.ShapeDtypeStruct((B, D), out_dtype),
                   jax.ShapeDtypeStruct((B, D), out_dtype)),
        grid=grid,
        in_specs=[
            pl.BlockSpec((block_b, F), lambda i: (i, 0)),   # x tile
            pl.BlockSpec((F, D), lambda i: (0, 0)),         # W_mu^T (resident)
            pl.BlockSpec((1, D), lambda i: (0, 0)),         # b_mu
            pl.BlockSpec((F, D), lambda i: (0, 0)),         # W_lv^T (resident)
            pl.BlockSpec((1, D), lambda i: (0, 0)),         # b_lv
        ],
        out_specs=(
            pl.BlockSpec((block_b, D), lambda i: (i, 0)),   # mu
            pl.BlockSpec((block_b, D), lambda i: (i, 0)),   # scale
        ),
        compiler_params=pltpu.CompilerParams(
            dimension_semantics=("parallel",)),
        cost_estimate=cost,
    )(x_mm, w_mu_t, b_mu2, w_lv_t, b_lv2)
    return mu, scale


def _reference(x, w_mu, b_mu, w_lv, b_lv):
    mu = x @ w_mu.T + b_mu
    lv = x @ w_lv.T + b_lv
    return mu, jax.nn.softplus(lv)


if __name__ == "__main__":
    # Small shapes consistent with the module: batch=8, num_feat_in=32, latentD=16.
    B, F, D = 8, 32, 16
    key = jax.random.PRNGKey(0)
    kx, kwm, kbm, kwl, kbl = jax.random.split(key, 5)

    # Deterministic parameter init (PyTorch nn.Linear-style uniform bounds).
    bound = 1.0 / jnp.sqrt(jnp.asarray(F, jnp.float32))
    x = jax.random.normal(kx, (B, F), dtype=jnp.float32)
    w_mu = jax.random.uniform(kwm, (D, F), jnp.float32, -bound, bound)
    b_mu = jax.random.uniform(kbm, (D,), jnp.float32, -bound, bound)
    w_lv = jax.random.uniform(kwl, (D, F), jnp.float32, -bound, bound)
    b_lv = jax.random.uniform(kbl, (D,), jnp.float32, -bound, bound)

    params = prepare_params(w_mu, b_mu, w_lv, b_lv)   # one-time weight prep

    mu, scale = jax.block_until_ready(normal_dist_decoder(x, params))
    mu_ref, scale_ref = _reference(x, w_mu, b_mu, w_lv, b_lv)
    assert mu.shape == (B, D) and scale.shape == (B, D)
    assert jnp.allclose(mu, mu_ref, atol=1e-5, rtol=1e-5)
    assert jnp.allclose(scale, scale_ref, atol=1e-5, rtol=1e-5)
    assert bool(jnp.all(scale > 0))   # valid Normal scale for these inputs

    # Ragged batch: B not divisible by block_b -> cdiv grid with a partial
    # last block handled by Pallas (no explicit padding pass over x).
    B2 = 13
    x2 = jax.random.normal(kx, (B2, F), dtype=jnp.float32)
    mu2, scale2 = jax.block_until_ready(
        normal_dist_decoder(x2, params, block_b=8))
    mu2_ref, scale2_ref = _reference(x2, w_mu, b_mu, w_lv, b_lv)
    assert mu2.shape == (B2, D) and scale2.shape == (B2, D)
    assert jnp.allclose(mu2, mu2_ref, atol=1e-5, rtol=1e-5)
    assert jnp.allclose(scale2, scale2_ref, atol=1e-5, rtol=1e-5)

    print("KERNEL_OK")
</pallas_src>

<mosaic_0001>
module attributes {stable_mosaic.version = 11 : i64} {
  func.func @_normal_dist_decoder_kernel(%arg0: i32, %arg1: memref<8x32xf32, #tpu.memory_space<vmem>>, %arg2: memref<32x16xf32, #tpu.memory_space<vmem>>, %arg3: memref<1x16xf32, #tpu.memory_space<vmem>>, %arg4: memref<32x16xf32, #tpu.memory_space<vmem>>, %arg5: memref<1x16xf32, #tpu.memory_space<vmem>>, %arg6: memref<8x16xf32, #tpu.memory_space<vmem>>, %arg7: memref<8x16xf32, #tpu.memory_space<vmem>>) attributes {dimension_semantics = [#tpu.dimension_semantics<parallel>], iteration_bounds = array<i64: 1>, scalar_prefetch = 0 : i64, scratch_operands = 0 : i64, tpu.core_type = #tpu.core_type<tc>, window_params = [{transform_indices = @transform_0, window_bounds = array<i64: 8, 32>}, {pipeline_mode = #tpu.pipeline_mode<synchronous>, transform_indices = @transform_1, window_bounds = array<i64: 32, 16>}, {pipeline_mode = #tpu.pipeline_mode<synchronous>, transform_indices = @transform_2, window_bounds = array<i64: 1, 16>}, {pipeline_mode = #tpu.pipeline_mode<synchronous>, transform_indices = @transform_3, window_bounds = array<i64: 32, 16>}, {pipeline_mode = #tpu.pipeline_mode<synchronous>, transform_indices = @transform_4, window_bounds = array<i64: 1, 16>}, {transform_indices = @transform_5, window_bounds = array<i64: 8, 16>}, {transform_indices = @transform_6, window_bounds = array<i64: 8, 16>}]} {
    %c0 = arith.constant 0 : index
    %c0_0 = arith.constant 0 : index
    %0 = vector.load %arg1[%c0, %c0_0] : memref<8x32xf32, #tpu.memory_space<vmem>>, vector<8x32xf32>
    %c0_1 = arith.constant 0 : index
    %c0_2 = arith.constant 0 : index
    %1 = vector.load %arg2[%c0_1, %c0_2] : memref<32x16xf32, #tpu.memory_space<vmem>>, vector<32x16xf32>
    %cst = arith.constant dense<0.000000e+00> : vector<8x16xf32>
    %2 = tpu.matmul %0, %1, %cst {dimension_numbers = #tpu.dot_dimension_numbers<[1], [0], [0], [1], [0, 0, 1, 1], [], []>} : vector<8x32xf32>, vector<32x16xf32>, vector<8x16xf32> -> vector<8x16xf32>
    %c0_3 = arith.constant 0 : index
    %c0_4 = arith.constant 0 : index
    %3 = vector.load %arg3[%c0_3, %c0_4] : memref<1x16xf32, #tpu.memory_space<vmem>>, vector<1x16xf32>
    %4 = vector.broadcast %3 : vector<1x16xf32> to vector<8x16xf32>
    %5 = arith.addf %2, %4 : vector<8x16xf32>
    %c0_5 = arith.constant 0 : index
    %c0_6 = arith.constant 0 : index
    %6 = vector.load %arg4[%c0_5, %c0_6] : memref<32x16xf32, #tpu.memory_space<vmem>>, vector<32x16xf32>
    %cst_7 = arith.constant dense<0.000000e+00> : vector<8x16xf32>
    %7 = tpu.matmul %0, %6, %cst_7 {dimension_numbers = #tpu.dot_dimension_numbers<[1], [0], [0], [1], [0, 0, 1, 1], [], []>} : vector<8x32xf32>, vector<32x16xf32>, vector<8x16xf32> -> vector<8x16xf32>
    %c0_8 = arith.constant 0 : index
    %c0_9 = arith.constant 0 : index
    %8 = vector.load %arg5[%c0_8, %c0_9] : memref<1x16xf32, #tpu.memory_space<vmem>>, vector<1x16xf32>
    %9 = vector.broadcast %8 : vector<1x16xf32> to vector<8x16xf32>
    %10 = arith.addf %7, %9 : vector<8x16xf32>
    %cst_10 = arith.constant 0.000000e+00 : f32
    %11 = vector.broadcast %cst_10 : f32 to vector<8x16xf32>
    %12 = arith.maximumf %10, %11 : vector<8x16xf32>
    %13 = math.absf %10 : vector<8x16xf32>
    %cst_11 = arith.constant 0.000000e+00 : f32
    %14 = vector.broadcast %cst_11 : f32 to vector<8x16xf32>
    %15 = arith.subf %14, %13 : vector<8x16xf32>
    %16 = math.exp %15 : vector<8x16xf32>
    %17 = math.log1p %16 : vector<8x16xf32>
    %18 = arith.addf %12, %17 : vector<8x16xf32>
    %c0_12 = arith.constant 0 : index
    %c0_13 = arith.constant 0 : index
    %19 = vector.load %arg6[%c0_12, %c0_13] : memref<8x16xf32, #tpu.memory_space<vmem>>, vector<8x16xf32>
    tpu.vector_store %arg6[%c0_12, %c0_13], %5 {strides = array<i32>} : memref<8x16xf32, #tpu.memory_space<vmem>>, vector<8x16xf32>,
    %c0_14 = arith.constant 0 : index
    %c0_15 = arith.constant 0 : index
    %20 = vector.load %arg7[%c0_14, %c0_15] : memref<8x16xf32, #tpu.memory_space<vmem>>, vector<8x16xf32>
    tpu.vector_store %arg7[%c0_14, %c0_15], %18 {strides = array<i32>} : memref<8x16xf32, #tpu.memory_space<vmem>>, vector<8x16xf32>,
    return
  }
  func.func @transform_0(%arg0: i32) -> (i32, i32) {
    %c0_i32 = arith.constant 0 : i32
    %c0_i32_0 = arith.constant 0 : i32
    return %arg0, %c0_i32 : i32, i32
  }
  func.func @transform_1(%arg0: i32) -> (i32, i32) {
    %c0_i32 = arith.constant 0 : i32
    %c0_i32_0 = arith.constant 0 : i32
    %c0_i32_1 = arith.constant 0 : i32
    return %c0_i32, %c0_i32_0 : i32, i32
  }
  func.func @transform_2(%arg0: i32) -> (i32, i32) {
    %c0_i32 = arith.constant 0 : i32
    %c0_i32_0 = arith.constant 0 : i32
    %c0_i32_1 = arith.constant 0 : i32
    return %c0_i32, %c0_i32_0 : i32, i32
  }
  func.func @transform_3(%arg0: i32) -> (i32, i32) {
    %c0_i32 = arith.constant 0 : i32
    %c0_i32_0 = arith.constant 0 : i32
    %c0_i32_1 = arith.constant 0 : i32
    return %c0_i32, %c0_i32_0 : i32, i32
  }
  func.func @transform_4(%arg0: i32) -> (i32, i32) {
    %c0_i32 = arith.constant 0 : i32
    %c0_i32_0 = arith.constant 0 : i32
    %c0_i32_1 = arith.constant 0 : i32
    return %c0_i32, %c0_i32_0 : i32, i32
  }
  func.func @transform_5(%arg0: i32) -> (i32, i32) {
    %c0_i32 = arith.constant 0 : i32
    %c0_i32_0 = arith.constant 0 : i32
    return %arg0, %c0_i32 : i32, i32
  }
  func.func @transform_6(%arg0: i32) -> (i32, i32) {
    %c0_i32 = arith.constant 0 : i32
    %c0_i32_0 = arith.constant 0 : i32
    return %arg0, %c0_i32 : i32, i32
  }
}

</mosaic_0001>

<bundles_post_ra>
// kernel: tpu_custom_call.1
= control target key start
LH: loop header
LB: loop body
LE: loop exit
PB: predicated region body
PF: predicated region fallthrough
CT: control target
= control target key end

     0   :  { %12 = vsyncpa [#allocation3], 0  ;;  %s275_s0 = inlined_call_operand.vmem [shape: f32[8,32], index: 0, kind: input, shape index: {}]   ;;  %s276_s1 = inlined_call_operand.vmem [shape: f32[32,16], index: 1, kind: input, shape index: {}]   ;;  %s277_s2 = inlined_call_operand.vmem [shape: f32[1,16], index: 2, kind: input, shape index: {}]   ;;  %s278_s3 = inlined_call_operand.vmem [shape: f32[32,16], index: 3, kind: input, shape index: {}]   ;;  %s279_s4 = inlined_call_operand.vmem [shape: f32[1,16], index: 4, kind: input, shape index: {}]   ;;  %s280_s5 = inlined_call_operand.hbm [shape: f32[8,16], index: 5, kind: output, shape index: {0}]   ;;  %s281_s6 = inlined_call_operand.hbm [shape: f32[8,16], index: 6, kind: output, shape index: {1}]  }
   0x1   :  { %v60_v0 = vld [vmem:[%s278_s3 + $0x18] sm:$0xff]  ;;  %v59_v1 = vld [vmem:[%s278_s3 + $0x10] sm:$0xff]  ;;  %v58_v3 = vld [vmem:[%s278_s3 + $0x8] sm:$0xff] }
   0x2   :  { %77 = vmatpush.msra.mxu1 %v60_v0  ;;  %v28_v2 = vld [vmem:[%s276_s1 + $0x18] sm:$0xff]  ;;  %v27_v4 = vld [vmem:[%s276_s1 + $0x10] sm:$0xff]  ;;  %v26_v5 = vld [vmem:[%s276_s1 + $0x8] sm:$0xff] }
   0x3   :  { %49 = vmatpush.msra.mxu0 %v28_v2  ;;  %v57_v6 = vld [vmem:[%s278_s3] sm:$0xff] }
   0x4   :  { %78 = vmatpush.msra.mxu1 %v59_v1 }
   0x5   :  { %50 = vmatpush.msra.mxu0 %v27_v4 }
   0x6   :  { %13 = vsyncpa [#allocation5], 0  ;;  %79 = vmatpush.msra.mxu1 %v58_v3  ;;  %v24_v7 = vld [vmem:[%s275_s0] sm:$0xff]  ;;  %vm33_vm0 = vcmask 261120   ;;  %s197_s18 = smov [#allocation2]   ;;  %s110_s21 = sshll.u32 %s280_s5, 4  ;;  %s111_s21 = int_to_ptr.hbm [resolvable:$true] %s110_s21 }
   0x7   :  { %v25_v8 = vld [vmem:[%s276_s1] sm:$0xff]  ;;  %51 = vmatpush.msra.mxu0 %v26_v5  ;;  %s108_s0 = sshll.u32 %s197_s18, 4  ;;  %vm100_vm1 = vcmask 130048   ;;  %s198_s1 = smov [#allocation4]   ;;  %s109_s0 = int_to_ptr.vmem [resolvable:$true] %s108_s0 }
   0x8   :  { %80 = vmatpush.msra.mxu1 %v57_v6  ;;  %v139_v9 = vld [vmem:[%s279_s4] ss:$0 sm:$0xff]  ;;  %s121_s22 = sshll.u32 %s281_s6, 4  ;;  %s122_s22 = int_to_ptr.hbm [resolvable:$true] %s121_s22 }
   0x9   :  { %136 = vmatmul.msk.f32.vlgmr.msra.gmra.mxu1 %vm33_vm0, %v24_v7  ;;  %52 = vmatpush.msra.mxu0 %v25_v8  ;;  %v140_v10 = vld [vmem:[%s277_s2] ss:$0 sm:$0xff]  ;;  %s119_s2 = sshll.u32 %s198_s1, 4  ;;  %s120_s2 = int_to_ptr.vmem [resolvable:$true] %s119_s2 }
   0xa   :  { %135 = vmatmul.msk.f32.vlgmr.msra.gmra.mxu0 %vm33_vm0, %v24_v7 }
  0x86   :  { %v82_v11 = vpop.f32.mrf.mxu1 }
  0x87   :  { %v83_v12 = vadd.f32 %v139_v9, %v82_v11  ;;  %v54_v13 = vpop.f32.mrf.mxu0 }
  0x88   :  { %v55_v14 = vadd.f32 %v140_v10, %v54_v13 }
  0x89   :  { %v86_v15 = vand.u32 2147483647, %v83_v12  ;;  %v85_v26 = vmax.f32 %v83_v12, 0.0 }
  0x8a   :  { %101 = vst.msk [vmem:[#allocation2] sm:$0xff] %vm100_vm1, %v55_v14 }
  0x8b   :  { %v87_v16 = vsub.f32 0.0, %v86_v15  ;;  %113 = dma.vmem_to_hbm [thread:$0]  %s109_s0, 128, %s111_s21, [#allocation3]  }
  0x8d   :  { %v88_v17 = vmul.f32 1.442695, %v87_v16 }
  0x8f   :  { %141 = vpow2.f32 %v88_v17 }
  0x95   :  { %v142_v18 = vpop.eup %141 }
  0x96   :  { %v90_v19 = vadd.f32 1.0, %v142_v18  ;;  %v93_v20 = vmul.f32 -0.5, %v142_v18  ;;  %v96_v22 = vand.u32 2147483647, %v142_v18 }
  0x98   :  { %143 = vlog2.f32 %v90_v19  ;;  %v94_v21 = vadd.f32 1.0, %v93_v20  ;;  %vm97_vm2 = vcmp.lt.f32.partialorder %v96_v22, 0.0004427343 }
  0x9a   :  { %v95_v25 = vmul.f32 %v142_v18, %v94_v21 }
  0x9e   :  { %v144_v23 = vpop.eup %143 }
  0x9f   :  { %v92_v24 = vmul.f32 0.6931472, %v144_v23 }
  0xa1   :  { %v98_v27 = vsel %vm97_vm2, %v95_v25, %v92_v24 }
  0xa2   :  { %v99_v28 = vadd.f32 %v98_v27, %v85_v26 }
  0xa4   :  { %102 = vst.msk [vmem:[#allocation4] sm:$0xff] %vm100_vm1, %v99_v28 }
  0xa5   :  { %124 = dma.vmem_to_hbm [thread:$0]  %s120_s2, 128, %s122_s22, [#allocation5]  }
  0xa6   :  { %193 = dma.done.wait [#allocation3], 128  }
  0xa7   :  { %194 = vsyncadd [#allocation3], 4294967168 }
  0xa8   :  { %195 = dma.done.wait [#allocation5], 128  }
  0xa9   :  { %196 = vsyncadd [#allocation5], 4294967168 }
  0xaa   :  { %133 = vsyncpa [#allocation3], 1 }
  0xab   :  { %134 = vsyncpa [#allocation5], 1 }

</bundles_post_ra>
